<compile_context>
chip_gen: v6e
topology: v6e:2x2x1
jax: 0.10.0
libtpu: 0.0.40
codegen_flags: <defaults>
</compile_context>

<pallas_src>
import functools

import jax
import jax.numpy as jnp
from jax.experimental import pallas as pl
from jax.experimental.pallas import tpu as pltpu


def _round_up(x, m):
    return ((x + m - 1) // m) * m


def intra_q_kernel(
    x_ref,        # [TB, obs]           f32
    opt_ref,      # [TB, option_dim]    f32
    act_ref,      # [TB, act_dim]       f32
    hx_ref,       # [TB, H]             f32
    cx_ref,       # [TB, H]             f32
    w_pre_x_ref,  # [obs, H]            bf16
    w_pre_o_ref,  # [option_dim, H]     bf16
    w_pre_a_ref,  # [act_dim, H]        bf16
    b_pre_ref,    # [1, H]              f32
    w_ih_ref,     # [H, 4H]  (i,f,o,g)  bf16
    w_hh_ref,     # [H, 4H]  (i,f,o,g)  bf16
    b_gates_ref,  # [1, 4H]  (i,f,o,g)  f32  (= b_ih + b_hh, folded offline)
    w_q_ref,      # [1, H]              f32
    b_q_ref,      # [1, 1]              f32  (SMEM scalar)
    q_ref,        # [TB, 1]             f32
    hy_ref,       # [TB, H]             f32
    cy_ref,       # [TB, H]             f32
):
    H = hx_ref.shape[-1]
    bf16 = jnp.bfloat16

    # ---- pre FC + ReLU: bf16 MXU matmuls, f32 accumulation / elementwise ----
    pre = (
        jnp.dot(x_ref[...].astype(bf16), w_pre_x_ref[...],
                preferred_element_type=jnp.float32)
        + jnp.dot(opt_ref[...].astype(bf16), w_pre_o_ref[...],
                  preferred_element_type=jnp.float32)
        + jnp.dot(act_ref[...].astype(bf16), w_pre_a_ref[...],
                  preferred_element_type=jnp.float32)
        + b_pre_ref[...]
    )
    pre = jnp.maximum(pre, 0.0)

    # ---- single-step LSTM cell ----
    # TODO(synk): for very large H (>~1024) on v7x, tile the 4H gate dimension
    # with an extra grid axis instead of keeping w_ih/w_hh fully VMEM-resident.
    gates = (
        jnp.dot(pre.astype(bf16), w_ih_ref[...],
                preferred_element_type=jnp.float32)
        + jnp.dot(hx_ref[...].astype(bf16), w_hh_ref[...],
                  preferred_element_type=jnp.float32)
        + b_gates_ref[...]
    )
    # Gate layout (i, f, o, g): one sigmoid over [TB, 3H], one tanh over [TB, H].
    sig = jax.nn.sigmoid(gates[:, : 3 * H])
    g_g = jnp.tanh(gates[:, 3 * H:])
    i_g = sig[:, :H]
    f_g = sig[:, H:2 * H]
    o_g = sig[:, 2 * H:3 * H]

    cy = f_g * cx_ref[...] + i_g * g_g
    hy = o_g * jnp.tanh(cy)

    # ---- Q head on the VPU (avoid N=1 MXU pass): q = sum(hy * w_q) + b_q ----
    q = jnp.sum(hy * w_q_ref[...], axis=-1, keepdims=True) + b_q_ref[0, 0]

    q_ref[...] = q.astype(q_ref.dtype)
    hy_ref[...] = hy.astype(hy_ref.dtype)
    cy_ref[...] = cy.astype(cy_ref.dtype)


@functools.partial(jax.jit, static_argnames=("tb",))
def intra_q_forward(x, option, action, hx, cx, params, *, tb=512):
    """Mirrors IntraQFunction.forward for the batched 2-D (seq_len=1) case.

    x:      [B, obs_dim]      option: [B, option_dim]   action: [B, act_dim]
    hx, cx: [B, hidden]
    Returns (q [B, 1], (hy [B, H], cy [B, H])).
    """
    B = x.shape[0]
    obs_dim = x.shape[-1]
    option_dim = option.shape[-1]
    act_dim = action.shape[-1]
    H = hx.shape[-1]

    # Batch tile: multiple of 8 sublanes, capped at `tb`; pad B to a whole grid.
    TB = min(tb, _round_up(B, 8))
    B_pad = _round_up(B, TB)
    if B_pad != B:
        pad2 = lambda a: jnp.pad(a, ((0, B_pad - B), (0, 0)))
        x, option, action, hx, cx = map(pad2, (x, option, action, hx, cx))

    grid = (pl.cdiv(B_pad, TB),)

    def batch_spec(n):  # tiled over the batch grid axis
        return pl.BlockSpec((TB, n), lambda i: (i, 0))

    def weight_spec(shape):  # constant index map -> VMEM-resident, DMA'd once
        return pl.BlockSpec(shape, lambda i: (0, 0))

    out_shapes = (
        jax.ShapeDtypeStruct((B_pad, 1), jnp.float32),
        jax.ShapeDtypeStruct((B_pad, H), jnp.float32),
        jax.ShapeDtypeStruct((B_pad, H), jnp.float32),
    )

    q, hy, cy = pl.pallas_call(
        intra_q_kernel,
        out_shape=out_shapes,
        grid=grid,
        in_specs=[
            batch_spec(obs_dim),
            batch_spec(option_dim),
            batch_spec(act_dim),
            batch_spec(H),
            batch_spec(H),
            weight_spec((obs_dim, H)),
            weight_spec((option_dim, H)),
            weight_spec((act_dim, H)),
            weight_spec((1, H)),
            weight_spec((H, 4 * H)),
            weight_spec((H, 4 * H)),
            weight_spec((1, 4 * H)),
            weight_spec((1, H)),
            pl.BlockSpec(memory_space=pltpu.MemorySpace.SMEM),  # b_q scalar
        ],
        out_specs=(
            pl.BlockSpec((TB, 1), lambda i: (i, 0)),
            batch_spec(H),
            batch_spec(H),
        ),
        compiler_params=pltpu.CompilerParams(
            dimension_semantics=("parallel",),          # megacore split on v7x
            vmem_limit_bytes=64 * 1024 * 1024,          # fits v5e/v6e/v7x
        ),
    )(
        x, option, action, hx, cx,
        params["w_pre_x"], params["w_pre_o"], params["w_pre_a"], params["b_pre"],
        params["w_ih"], params["w_hh"], params["b_gates"],
        params["w_q"], params["b_q"],
    )
    return q[:B], (hy[:B], cy[:B])


def init_torch_params(key, obs_dim, act_dim, option_dim, hidden):
    """Synthetic params in PyTorch layout (Linear: [out,in]; LSTM gates i,f,g,o)."""
    D = obs_dim + option_dim + act_dim
    ks = jax.random.split(key, 8)
    s = 0.1
    return {
        "w_pre": s * jax.random.normal(ks[0], (hidden, D), jnp.float32),
        "b_pre": s * jax.random.normal(ks[1], (hidden,), jnp.float32),
        "w_ih": s * jax.random.normal(ks[2], (4 * hidden, hidden), jnp.float32),
        "b_ih": s * jax.random.normal(ks[3], (4 * hidden,), jnp.float32),
        "w_hh": s * jax.random.normal(ks[4], (4 * hidden, hidden), jnp.float32),
        "b_hh": s * jax.random.normal(ks[5], (4 * hidden,), jnp.float32),
        "w_q": s * jax.random.normal(ks[6], (1, hidden), jnp.float32),
        "b_q": s * jax.random.normal(ks[7], (1,), jnp.float32),
    }


def pack_params(tp, obs_dim, option_dim, act_dim):
    """Offline repack: transpose, split pre-FC rows, reorder gates (i,f,g,o)->(i,f,o,g),
    fold LSTM biases, cast MXU weights to bf16."""
    H = tp["b_pre"].shape[0]
    w_pre_t = tp["w_pre"].T  # [D, H]
    perm = jnp.concatenate([
        jnp.arange(0, H),            # i
        jnp.arange(H, 2 * H),        # f
        jnp.arange(3 * H, 4 * H),    # o
        jnp.arange(2 * H, 3 * H),    # g
    ])
    return {
        "w_pre_x": w_pre_t[:obs_dim].astype(jnp.bfloat16),
        "w_pre_o": w_pre_t[obs_dim:obs_dim + option_dim].astype(jnp.bfloat16),
        "w_pre_a": w_pre_t[obs_dim + option_dim:].astype(jnp.bfloat16),
        "b_pre": tp["b_pre"][None, :].astype(jnp.float32),
        "w_ih": tp["w_ih"].T[:, perm].astype(jnp.bfloat16),
        "w_hh": tp["w_hh"].T[:, perm].astype(jnp.bfloat16),
        "b_gates": (tp["b_ih"] + tp["b_hh"])[perm][None, :].astype(jnp.float32),
        "w_q": tp["w_q"].astype(jnp.float32),                 # [1, H] row
        "b_q": tp["b_q"].reshape(1, 1).astype(jnp.float32),   # SMEM scalar
    }


if __name__ == "__main__":
    B = 2
    obs_dim = 16
    option_dim = 4
    act_dim = 8
    hidden = 32

    key = jax.random.PRNGKey(0)
    k_p, k_x, k_o, k_a, k_h, k_c = jax.random.split(key, 6)

    torch_params = init_torch_params(k_p, obs_dim, act_dim, option_dim, hidden)
    params = pack_params(torch_params, obs_dim, option_dim, act_dim)

    x = jax.random.normal(k_x, (B, obs_dim), jnp.float32)
    option = jax.random.normal(k_o, (B, option_dim), jnp.float32)
    action = jax.random.normal(k_a, (B, act_dim), jnp.float32)
    hx = jax.random.normal(k_h, (B, hidden), jnp.float32)
    cx = jax.random.normal(k_c, (B, hidden), jnp.float32)

    q, (hy, cy) = intra_q_forward(x, option, action, hx, cx, params)
    jax.block_until_ready((q, hy, cy))

    # ---- plain-JAX reference in torch layout / torch gate order (i,f,g,o),
    #      with the same bf16 MXU casts as the kernel ----
    bf16 = jnp.bfloat16
    H = hidden
    tp = torch_params
    xcat = jnp.concatenate([x, option, action], axis=-1)
    pre = jnp.maximum(
        jnp.dot(xcat.astype(bf16), tp["w_pre"].T.astype(bf16),
                preferred_element_type=jnp.float32) + tp["b_pre"], 0.0)
    gates = (
        jnp.dot(pre.astype(bf16), tp["w_ih"].T.astype(bf16),
                preferred_element_type=jnp.float32)
        + jnp.dot(hx.astype(bf16), tp["w_hh"].T.astype(bf16),
                  preferred_element_type=jnp.float32)
        + tp["b_ih"] + tp["b_hh"]
    )
    i_g = jax.nn.sigmoid(gates[:, 0 * H:1 * H])
    f_g = jax.nn.sigmoid(gates[:, 1 * H:2 * H])
    g_g = jnp.tanh(gates[:, 2 * H:3 * H])
    o_g = jax.nn.sigmoid(gates[:, 3 * H:4 * H])
    cy_ref = f_g * cx + i_g * g_g
    hy_ref = o_g * jnp.tanh(cy_ref)
    q_ref = hy_ref @ tp["w_q"].T + tp["b_q"]

    assert q.shape == (B, 1) and hy.shape == (B, hidden) and cy.shape == (B, hidden)
    assert jnp.allclose(q, q_ref, atol=1e-3, rtol=1e-3), "q mismatch"
    assert jnp.allclose(hy, hy_ref, atol=1e-3, rtol=1e-3), "hy mismatch"
    assert jnp.allclose(cy, cy_ref, atol=1e-3, rtol=1e-3), "cy mismatch"

    print("KERNEL_OK")
</pallas_src>

<mosaic_0001>
module attributes {stable_mosaic.version = 11 : i64} {
  func.func @intra_q_kernel(%arg0: i32, %arg1: memref<8x16xf32, #tpu.memory_space<vmem>>, %arg2: memref<8x4xf32, #tpu.memory_space<vmem>>, %arg3: memref<8x8xf32, #tpu.memory_space<vmem>>, %arg4: memref<8x32xf32, #tpu.memory_space<vmem>>, %arg5: memref<8x32xf32, #tpu.memory_space<vmem>>, %arg6: memref<16x32xbf16, #tpu.memory_space<vmem>>, %arg7: memref<4x32xbf16, #tpu.memory_space<vmem>>, %arg8: memref<8x32xbf16, #tpu.memory_space<vmem>>, %arg9: memref<1x32xf32, #tpu.memory_space<vmem>>, %arg10: memref<32x128xbf16, #tpu.memory_space<vmem>>, %arg11: memref<32x128xbf16, #tpu.memory_space<vmem>>, %arg12: memref<1x128xf32, #tpu.memory_space<vmem>>, %arg13: memref<1x32xf32, #tpu.memory_space<vmem>>, %arg14: memref<1x1xf32, #tpu.memory_space<smem>>, %arg15: memref<8x1xf32, #tpu.memory_space<vmem>>, %arg16: memref<8x32xf32, #tpu.memory_space<vmem>>, %arg17: memref<8x32xf32, #tpu.memory_space<vmem>>) attributes {dimension_semantics = [#tpu.dimension_semantics<parallel>], iteration_bounds = array<i64: 1>, scalar_prefetch = 0 : i64, scratch_operands = 0 : i64, tpu.core_type = #tpu.core_type<tc>, window_params = [{transform_indices = @transform_0, window_bounds = array<i64: 8, 16>}, {transform_indices = @transform_1, window_bounds = array<i64: 8, 4>}, {transform_indices = @transform_2, window_bounds = array<i64: 8, 8>}, {transform_indices = @transform_3, window_bounds = array<i64: 8, 32>}, {transform_indices = @transform_4, window_bounds = array<i64: 8, 32>}, {pipeline_mode = #tpu.pipeline_mode<synchronous>, transform_indices = @transform_5, window_bounds = array<i64: 16, 32>}, {pipeline_mode = #tpu.pipeline_mode<synchronous>, transform_indices = @transform_6, window_bounds = array<i64: 4, 32>}, {pipeline_mode = #tpu.pipeline_mode<synchronous>, transform_indices = @transform_7, window_bounds = array<i64: 8, 32>}, {pipeline_mode = #tpu.pipeline_mode<synchronous>, transform_indices = @transform_8, window_bounds = array<i64: 1, 32>}, {pipeline_mode = #tpu.pipeline_mode<synchronous>, transform_indices = @transform_9, window_bounds = array<i64: 32, 128>}, {pipeline_mode = #tpu.pipeline_mode<synchronous>, transform_indices = @transform_10, window_bounds = array<i64: 32, 128>}, {pipeline_mode = #tpu.pipeline_mode<synchronous>, transform_indices = @transform_11, window_bounds = array<i64: 1, 128>}, {pipeline_mode = #tpu.pipeline_mode<synchronous>, transform_indices = @transform_12, window_bounds = array<i64: 1, 32>}, {transform_indices = @transform_13, window_bounds = array<i64: 1, 1>}, {transform_indices = @transform_14, window_bounds = array<i64: 8, 1>}, {transform_indices = @transform_15, window_bounds = array<i64: 8, 32>}, {transform_indices = @transform_16, window_bounds = array<i64: 8, 32>}]} {
    %c0 = arith.constant 0 : index
    %c0_0 = arith.constant 0 : index
    %0 = vector.load %arg1[%c0, %c0_0] : memref<8x16xf32, #tpu.memory_space<vmem>>, vector<8x16xf32>
    %1 = arith.truncf %0 : vector<8x16xf32> to vector<8x16xbf16>
    %c0_1 = arith.constant 0 : index
    %c0_2 = arith.constant 0 : index
    %2 = vector.load %arg6[%c0_1, %c0_2] : memref<16x32xbf16, #tpu.memory_space<vmem>>, vector<16x32xbf16>
    %cst = arith.constant dense<0.000000e+00> : vector<8x32xf32>
    %3 = tpu.matmul %1, %2, %cst {dimension_numbers = #tpu.dot_dimension_numbers<[1], [0], [0], [1], [0, 0, 1, 1], [], []>} : vector<8x16xbf16>, vector<16x32xbf16>, vector<8x32xf32> -> vector<8x32xf32>
    %c0_3 = arith.constant 0 : index
    %c0_4 = arith.constant 0 : index
    %4 = vector.load %arg2[%c0_3, %c0_4] : memref<8x4xf32, #tpu.memory_space<vmem>>, vector<8x4xf32>
    %5 = arith.truncf %4 : vector<8x4xf32> to vector<8x4xbf16>
    %c0_5 = arith.constant 0 : index
    %c0_6 = arith.constant 0 : index
    %6 = vector.load %arg7[%c0_5, %c0_6] : memref<4x32xbf16, #tpu.memory_space<vmem>>, vector<4x32xbf16>
    %cst_7 = arith.constant dense<0.000000e+00> : vector<8x32xf32>
    %7 = tpu.matmul %5, %6, %cst_7 {dimension_numbers = #tpu.dot_dimension_numbers<[1], [0], [0], [1], [0, 0, 1, 1], [], []>} : vector<8x4xbf16>, vector<4x32xbf16>, vector<8x32xf32> -> vector<8x32xf32>
    %8 = arith.addf %3, %7 : vector<8x32xf32>
    %c0_8 = arith.constant 0 : index
    %c0_9 = arith.constant 0 : index
    %9 = vector.load %arg3[%c0_8, %c0_9] : memref<8x8xf32, #tpu.memory_space<vmem>>, vector<8x8xf32>
    %10 = arith.truncf %9 : vector<8x8xf32> to vector<8x8xbf16>
    %c0_10 = arith.constant 0 : index
    %c0_11 = arith.constant 0 : index
    %11 = vector.load %arg8[%c0_10, %c0_11] : memref<8x32xbf16, #tpu.memory_space<vmem>>, vector<8x32xbf16>
    %cst_12 = arith.constant dense<0.000000e+00> : vector<8x32xf32>
    %12 = tpu.matmul %10, %11, %cst_12 {dimension_numbers = #tpu.dot_dimension_numbers<[1], [0], [0], [1], [0, 0, 1, 1], [], []>} : vector<8x8xbf16>, vector<8x32xbf16>, vector<8x32xf32> -> vector<8x32xf32>
    %13 = arith.addf %8, %12 : vector<8x32xf32>
    %c0_13 = arith.constant 0 : index
    %c0_14 = arith.constant 0 : index
    %14 = vector.load %arg9[%c0_13, %c0_14] : memref<1x32xf32, #tpu.memory_space<vmem>>, vector<1x32xf32>
    %15 = vector.broadcast %14 : vector<1x32xf32> to vector<8x32xf32>
    %16 = arith.addf %13, %15 : vector<8x32xf32>
    %cst_15 = arith.constant 0.000000e+00 : f32
    %17 = vector.broadcast %cst_15 : f32 to vector<8x32xf32>
    %18 = arith.maximumf %16, %17 : vector<8x32xf32>
    %19 = arith.truncf %18 : vector<8x32xf32> to vector<8x32xbf16>
    %c0_16 = arith.constant 0 : index
    %c0_17 = arith.constant 0 : index
    %20 = vector.load %arg10[%c0_16, %c0_17] : memref<32x128xbf16, #tpu.memory_space<vmem>>, vector<32x128xbf16>
    %cst_18 = arith.constant dense<0.000000e+00> : vector<8x128xf32>
    %21 = tpu.matmul %19, %20, %cst_18 {dimension_numbers = #tpu.dot_dimension_numbers<[1], [0], [0], [1], [0, 0, 1, 1], [], []>} : vector<8x32xbf16>, vector<32x128xbf16>, vector<8x128xf32> -> vector<8x128xf32>
    %c0_19 = arith.constant 0 : index
    %c0_20 = arith.constant 0 : index
    %22 = vector.load %arg4[%c0_19, %c0_20] : memref<8x32xf32, #tpu.memory_space<vmem>>, vector<8x32xf32>
    %23 = arith.truncf %22 : vector<8x32xf32> to vector<8x32xbf16>
    %c0_21 = arith.constant 0 : index
    %c0_22 = arith.constant 0 : index
    %24 = vector.load %arg11[%c0_21, %c0_22] : memref<32x128xbf16, #tpu.memory_space<vmem>>, vector<32x128xbf16>
    %cst_23 = arith.constant dense<0.000000e+00> : vector<8x128xf32>
    %25 = tpu.matmul %23, %24, %cst_23 {dimension_numbers = #tpu.dot_dimension_numbers<[1], [0], [0], [1], [0, 0, 1, 1], [], []>} : vector<8x32xbf16>, vector<32x128xbf16>, vector<8x128xf32> -> vector<8x128xf32>
    %26 = arith.addf %21, %25 : vector<8x128xf32>
    %c0_24 = arith.constant 0 : index
    %c0_25 = arith.constant 0 : index
    %27 = vector.load %arg12[%c0_24, %c0_25] : memref<1x128xf32, #tpu.memory_space<vmem>>, vector<1x128xf32>
    %28 = vector.broadcast %27 : vector<1x128xf32> to vector<8x128xf32>
    %29 = arith.addf %26, %28 : vector<8x128xf32>
    %30 = vector.extract_strided_slice %29 {offsets = [0, 0], sizes = [8, 96], strides = [1, 1]} : vector<8x128xf32> to vector<8x96xf32>
    %31 = arith.negf %30 : vector<8x96xf32>
    %32 = math.exp %31 : vector<8x96xf32>
    %cst_26 = arith.constant 1.000000e+00 : f32
    %33 = vector.broadcast %cst_26 : f32 to vector<8x96xf32>
    %34 = arith.addf %33, %32 : vector<8x96xf32>
    %35 = arith.divf %33, %34 : vector<8x96xf32>
    %36 = vector.extract_strided_slice %29 {offsets = [0, 96], sizes = [8, 32], strides = [1, 1]} : vector<8x128xf32> to vector<8x32xf32>
    %37 = math.tanh %36 : vector<8x32xf32>
    %38 = vector.extract_strided_slice %35 {offsets = [0, 0], sizes = [8, 32], strides = [1, 1]} : vector<8x96xf32> to vector<8x32xf32>
    %39 = vector.extract_strided_slice %35 {offsets = [0, 32], sizes = [8, 32], strides = [1, 1]} : vector<8x96xf32> to vector<8x32xf32>
    %40 = vector.extract_strided_slice %35 {offsets = [0, 64], sizes = [8, 32], strides = [1, 1]} : vector<8x96xf32> to vector<8x32xf32>
    %c0_27 = arith.constant 0 : index
    %c0_28 = arith.constant 0 : index
    %41 = vector.load %arg5[%c0_27, %c0_28] : memref<8x32xf32, #tpu.memory_space<vmem>>, vector<8x32xf32>
    %42 = arith.mulf %39, %41 : vector<8x32xf32>
    %43 = arith.mulf %38, %37 : vector<8x32xf32>
    %44 = arith.addf %42, %43 : vector<8x32xf32>
    %45 = math.tanh %44 : vector<8x32xf32>
    %46 = arith.mulf %40, %45 : vector<8x32xf32>
    %c0_29 = arith.constant 0 : index
    %c0_30 = arith.constant 0 : index
    %47 = vector.load %arg13[%c0_29, %c0_30] : memref<1x32xf32, #tpu.memory_space<vmem>>, vector<1x32xf32>
    %48 = vector.broadcast %47 : vector<1x32xf32> to vector<8x32xf32>
    %49 = arith.mulf %46, %48 : vector<8x32xf32>
    %cst_31 = arith.constant dense<0.000000e+00> : vector<8xf32>
    %50 = vector.multi_reduction <add>, %49, %cst_31 [1] : vector<8x32xf32> to vector<8xf32>
    %51 = vector.shape_cast %50 : vector<8xf32> to vector<8x1xf32>
    %c0_32 = arith.constant 0 : index
    %c0_33 = arith.constant 0 : index
    %52 = memref.load %arg14[%c0_32, %c0_33] : memref<1x1xf32, #tpu.memory_space<smem>>
    %53 = vector.broadcast %52 : f32 to vector<8x1xf32>
    %54 = arith.addf %51, %53 : vector<8x1xf32>
    %c0_34 = arith.constant 0 : index
    %c0_35 = arith.constant 0 : index
    %55 = vector.load %arg15[%c0_34, %c0_35] : memref<8x1xf32, #tpu.memory_space<vmem>>, vector<8x1xf32>
    tpu.vector_store %arg15[%c0_34, %c0_35], %54 {strides = array<i32>} : memref<8x1xf32, #tpu.memory_space<vmem>>, vector<8x1xf32>,
    %c0_36 = arith.constant 0 : index
    %c0_37 = arith.constant 0 : index
    %56 = vector.load %arg16[%c0_36, %c0_37] : memref<8x32xf32, #tpu.memory_space<vmem>>, vector<8x32xf32>
    tpu.vector_store %arg16[%c0_36, %c0_37], %46 {strides = array<i32>} : memref<8x32xf32, #tpu.memory_space<vmem>>, vector<8x32xf32>,
    %c0_38 = arith.constant 0 : index
    %c0_39 = arith.constant 0 : index
    %57 = vector.load %arg17[%c0_38, %c0_39] : memref<8x32xf32, #tpu.memory_space<vmem>>, vector<8x32xf32>
    tpu.vector_store %arg17[%c0_38, %c0_39], %44 {strides = array<i32>} : memref<8x32xf32, #tpu.memory_space<vmem>>, vector<8x32xf32>,
    return
  }
  func.func @transform_0(%arg0: i32) -> (i32, i32) {
    %c0_i32 = arith.constant 0 : i32
    %c0_i32_0 = arith.constant 0 : i32
    return %arg0, %c0_i32 : i32, i32
  }
  func.func @transform_1(%arg0: i32) -> (i32, i32) {
    %c0_i32 = arith.constant 0 : i32
    %c0_i32_0 = arith.constant 0 : i32
    return %arg0, %c0_i32 : i32, i32
  }
  func.func @transform_2(%arg0: i32) -> (i32, i32) {
    %c0_i32 = arith.constant 0 : i32
    %c0_i32_0 = arith.constant 0 : i32
    return %arg0, %c0_i32 : i32, i32
  }
  func.func @transform_3(%arg0: i32) -> (i32, i32) {
    %c0_i32 = arith.constant 0 : i32
    %c0_i32_0 = arith.constant 0 : i32
    return %arg0, %c0_i32 : i32, i32
  }
  func.func @transform_4(%arg0: i32) -> (i32, i32) {
    %c0_i32 = arith.constant 0 : i32
    %c0_i32_0 = arith.constant 0 : i32
    return %arg0, %c0_i32 : i32, i32
  }
  func.func @transform_5(%arg0: i32) -> (i32, i32) {
    %c0_i32 = arith.constant 0 : i32
    %c0_i32_0 = arith.constant 0 : i32
    %c0_i32_1 = arith.constant 0 : i32
    return %c0_i32, %c0_i32_0 : i32, i32
  }
  func.func @transform_6(%arg0: i32) -> (i32, i32) {
    %c0_i32 = arith.constant 0 : i32
    %c0_i32_0 = arith.constant 0 : i32
    %c0_i32_1 = arith.constant 0 : i32
    return %c0_i32, %c0_i32_0 : i32, i32
  }
  func.func @transform_7(%arg0: i32) -> (i32, i32) {
    %c0_i32 = arith.constant 0 : i32
    %c0_i32_0 = arith.constant 0 : i32
    %c0_i32_1 = arith.constant 0 : i32
    return %c0_i32, %c0_i32_0 : i32, i32
  }
  func.func @transform_8(%arg0: i32) -> (i32, i32) {
    %c0_i32 = arith.constant 0 : i32
    %c0_i32_0 = arith.constant 0 : i32
    %c0_i32_1 = arith.constant 0 : i32
    return %c0_i32, %c0_i32_0 : i32, i32
  }
  func.func @transform_9(%arg0: i32) -> (i32, i32) {
    %c0_i32 = arith.constant 0 : i32
    %c0_i32_0 = arith.constant 0 : i32
    %c0_i32_1 = arith.constant 0 : i32
    return %c0_i32, %c0_i32_0 : i32, i32
  }
  func.func @transform_10(%arg0: i32) -> (i32, i32) {
    %c0_i32 = arith.constant 0 : i32
    %c0_i32_0 = arith.constant 0 : i32
    %c0_i32_1 = arith.constant 0 : i32
    return %c0_i32, %c0_i32_0 : i32, i32
  }
  func.func @transform_11(%arg0: i32) -> (i32, i32) {
    %c0_i32 = arith.constant 0 : i32
    %c0_i32_0 = arith.constant 0 : i32
    %c0_i32_1 = arith.constant 0 : i32
    return %c0_i32, %c0_i32_0 : i32, i32
  }
  func.func @transform_12(%arg0: i32) -> (i32, i32) {
    %c0_i32 = arith.constant 0 : i32
    %c0_i32_0 = arith.constant 0 : i32
    %c0_i32_1 = arith.constant 0 : i32
    return %c0_i32, %c0_i32_0 : i32, i32
  }
  func.func @transform_13(%arg0: i32) -> (i32, i32) {
    %c0_i32 = arith.constant 0 : i32
    %c0_i32_0 = arith.constant 0 : i32
    %c0_i32_1 = arith.constant 0 : i32
    return %c0_i32, %c0_i32_0 : i32, i32
  }
  func.func @transform_14(%arg0: i32) -> (i32, i32) {
    %c0_i32 = arith.constant 0 : i32
    %c0_i32_0 = arith.constant 0 : i32
    return %arg0, %c0_i32 : i32, i32
  }
  func.func @transform_15(%arg0: i32) -> (i32, i32) {
    %c0_i32 = arith.constant 0 : i32
    %c0_i32_0 = arith.constant 0 : i32
    return %arg0, %c0_i32 : i32, i32
  }
  func.func @transform_16(%arg0: i32) -> (i32, i32) {
    %c0_i32 = arith.constant 0 : i32
    %c0_i32_0 = arith.constant 0 : i32
    return %arg0, %c0_i32 : i32, i32
  }
}

</mosaic_0001>

<bundles_post_ra>
// kernel: intra_q_forward.1
= control target key start
LH: loop header
LB: loop body
LE: loop exit
PB: predicated region body
PF: predicated region fallthrough
CT: control target
= control target key end

     0   :  { %vm63_vm0 = vcmask 1041408   ;;  %v499_v0 = vmov 0.0   ;;  %vm500_vm1 = vmmov 0   ;;  %vm164_vm2 = vcmask 1043456   ;;  %s502_s28 = smov 64   ;;  %s656_s6 = inlined_call_operand.vmem [shape: bf16[4,32], index: 6, kind: input, shape index: {}]   ;;  %s657_s5 = inlined_call_operand.vmem [shape: bf16[16,32], index: 5, kind: input, shape index: {}]   ;;  %s658_s1 = inlined_call_operand.vmem [shape: f32[8,4], index: 1, kind: input, shape index: {}]   ;;  %s659_s0 = inlined_call_operand.vmem [shape: f32[8,16], index: 0, kind: input, shape index: {}]   ;;  %s660_s7 = inlined_call_operand.vmem [shape: bf16[8,32], index: 7, kind: input, shape index: {}]   ;;  %s661_s2 = inlined_call_operand.vmem [shape: f32[8,8], index: 2, kind: input, shape index: {}]   ;;  %s662_s10 = inlined_call_operand.vmem [shape: bf16[32,128], index: 10, kind: input, shape index: {}]   ;;  %s663_s9 = inlined_call_operand.vmem [shape: bf16[32,128], index: 9, kind: input, shape index: {}]   ;;  %s664_s3 = inlined_call_operand.vmem [shape: f32[8,32], index: 3, kind: input, shape index: {}]   ;;  %s665_s8 = inlined_call_operand.vmem [shape: f32[1,32], index: 8, kind: input, shape index: {}]   ;;  %s666_s11 = inlined_call_operand.vmem [shape: f32[1,128], index: 11, kind: input, shape index: {}]   ;;  %s667_s4 = inlined_call_operand.vmem [shape: f32[8,32], index: 4, kind: input, shape index: {}]   ;;  %s668_s12 = inlined_call_operand.vmem [shape: f32[1,32], index: 12, kind: input, shape index: {}]   ;;  %s669_s15 = inlined_call_operand.vmem [shape: f32[8,32], index: 15, kind: output, shape index: {1}]   ;;  %s670_s16 = inlined_call_operand.vmem [shape: f32[8,32], index: 16, kind: output, shape index: {2}]   ;;  %s671_s13 = inlined_call_operand.<no memory space> [shape: f32[1,1], index: 13, kind: input, shape index: {}]   ;;  %s672_s14 = inlined_call_operand.vmem [shape: f32[8,1], index: 14, kind: output, shape index: {0}]  }
   0x1   :  { %673 = sst [smem:[#allocation3_spill]] %s656_s6  ;;  %447 = vmatprep.subr.bf16.mxu0 %v499_v0  ;;  %453 = vmatprep.subr.bf16.mxu1 %v499_v0  ;;  %v486_v3 = vld [vmem:[%s657_s5] sm:$0xff]   ;;  %vm59_vm3 = vcmask 31744   ;;  %vm113_vm4 = vcmask 130048   ;;  %vm160_vm5 = vcmask 64512   ;;  %v487_v12 = vld [vmem:[%s662_s10 + $0x8] sm:$0xff]  }
   0x2   :  { %s674_s23 = sld [smem:[#allocation3_spill]]  ;;  %449 = vmatprep.mubr.msk.bf16.mxu0 %vm500_vm1, %v499_v0  ;;  %v56_v4 = vld [vmem:[%s658_s1] sm:$0xff]  ;;  %455 = vmatprep.mubr.msk.bf16.mxu1 %vm500_vm1, %v499_v0  ;;  %v489_v14 = vld [vmem:[%s663_s9 + $0x8] sm:$0xff]   ;;  %vm241_vm6 = vcmask 261120   ;;  %vm397_vm7 = vcmask 7168  }
   0x3   :  { %v52_v5 = vld [vmem:[%s659_s0] sm:$0xff]  ;;  %v57_v6 = vpack.c.bf16 %v56_v4, %v56_v4  ;;  %454 = vmatpush3.bf16.msra.mxu1 %v486_v3 }
   0x4   :  { %v53_v7 = vpack.c.bf16 %v52_v5, %v52_v5  ;;  %v159_v8 = vld [vmem:[%s660_s7] sm:$0xf]  ;;  %465 = vmatprep.subr.bf16.mxu1 %v499_v0  ;;  %v395_v5 = vstv %s671_s13 }
   0x5   :  { %v166_v9 = vsel %vm164_vm2, %v159_v8, 0  ;;  %v157_v10 = vld [vmem:[%s661_s2] sm:$0xff] }
   0x6   :  { %456 = vmatmul.mubr.msk.bf16.vlgmr.msra.gmra.mxu1 %vm113_vm4, %v53_v7  ;;  %v158_v11 = vpack.c.bf16 %v157_v10, %v157_v10  ;;  %v488_v13 = vld [vmem:[%s662_s10] sm:$0xff]  }
   0x7   :  { %469 = vmatprep.mubr.msk.bf16.mxu1 %vm500_vm1, %v499_v0  ;;  %466 = vmatpush3.bf16.msra.mxu1 %v487_v12  ;;  %v223_v15 = vld [vmem:[%s664_s3] sm:$0xff] }
   0x8   :  { %v58_v1 = vld [vmem:[%s674_s23] sm:$0x3]  ;;  %467 = vmatprep.subr.bf16.mxu1 %v499_v0  ;;  %v224_v16 = vpack.c.bf16 %v223_v15, %v223_v15 }
   0x9   :  { %v65_v2 = vsel %vm63_vm0, %v58_v1, 0  ;;  %v490_v17 = vld [vmem:[%s663_s9] sm:$0xff]  }
   0xa   :  { %448 = vmatpush3.bf16.msra.mxu0 %v65_v2  ;;  %v425_v28 = vld [vmem:[%s665_s8] ss:$0 sm:$0xff]  ;;  %s501_s8 = smov 32  }
   0xb   :  { %459 = vmatprep.subr.bf16.mxu0 %v499_v0  ;;  %468 = vmatpush3.bf16.msra.mxu1 %v488_v13  ;;  %v432_v41 = vld [vmem:[%s666_s11] ss:$0 sm:$0xff] }
   0xc   :  { %v355_v48 = vld [vmem:[%s667_s4] sm:$0xff]  ;;  %s503_s4 = smov 96  }
   0xd   :  { %450 = vmatmul.mubr.msk.bf16.vlgmr.msra.gmra.mxu0 %vm59_vm3, %v57_v6  ;;  %v434_v55 = vld [vmem:[%s668_s12] ss:$0 sm:$0xff] }
   0xe   :  { %460 = vmatpush3.bf16.msra.mxu0 %v166_v9  ;;  %461 = vmatprep.mubr.msk.bf16.mxu0 %vm500_vm1, %v499_v0 }
   0xf   :  { %473 = vmatprep.subr.bf16.mxu0 %v499_v0  ;;  %470 = vmatmul.mubr.msk.bf16.vlgmr.msra.gmra.mxu1 %vm241_vm6, %v224_v16 }
  0x15   :  { %462 = vmatmul.mubr.msk.bf16.vlgmr.msra.gmra.mxu0 %vm160_vm5, %v158_v11 }
  0x16   :  { %477 = vmatprep.mubr.msk.bf16.mxu0 %vm500_vm1, %v499_v0  ;;  %474 = vmatpush3.bf16.msra.mxu0 %v489_v14 }
  0x17   :  { %475 = vmatprep.subr.bf16.mxu0 %v499_v0 }
  0x1a   :  { %476 = vmatpush3.bf16.msra.mxu0 %v490_v17 }
  0xc6   :  { %v151_v19 = vpop.f32.mrf.mxu1 }
  0xc8   :  { %v457_v21 = vpop.f32.mrf.mxu1 }
  0xca   :  { %v154_v23 = vpop.f32.mrf.mxu1 }
  0xcc   :  { %v458_v26 = vpop.f32.mrf.mxu1 }
  0xcd   :  { %v101_v18 = vpop.f32.mrf.mxu0 }
  0xce   :  { %v152_v25 = vadd.f32 %v151_v19, %v101_v18 }
  0xcf   :  { %v451_v20 = vpop.f32.mrf.mxu0  ;;  %v279_v36 = vpop.f32.mrf.mxu1 }
  0xd1   :  { %v104_v22 = vpop.f32.mrf.mxu0  ;;  %v471_v37 = vpop.f32.mrf.mxu1 }
  0xd3   :  { %v452_v24 = vpop.f32.mrf.mxu0  ;;  %v282_v38 = vpop.f32.mrf.mxu1 }
  0xd5   :  { %v202_v27 = vpop.f32.mrf.mxu0  ;;  %v472_v39 = vpop.f32.mrf.mxu1 }
  0xd6   :  { %v208_v29 = vadd.f32 %v202_v27, %v152_v25 }
  0xd7   :  { %v463_v30 = vpop.f32.mrf.mxu0 }
  0xd8   :  { %v216_v31 = vadd.f32 %v425_v28, %v208_v29 }
  0xd9   :  { %v205_v32 = vpop.f32.mrf.mxu0 }
  0xda   :  { %v217_v33 = vmax.f32 %v216_v31, 0.0 }
  0xdb   :  { %v464_v34 = vpop.f32.mrf.mxu0 }
  0xdc   :  { %v218_v35 = vpack.c.bf16 %v217_v33, %v217_v33 }
  0xde   :  { %478 = vmatmul.mubr.msk.bf16.vlgmr.msra.gmra.mxu0 %vm241_vm6, %v218_v35 }
 0x19e   :  { %v334_v40 = vpop.f32.mrf.mxu0 }
 0x19f   :  { %v335_v42 = vadd.f32 %v334_v40, %v279_v36 }
 0x1a0   :  { %v479_v43 = vpop.f32.mrf.mxu0 }
 0x1a1   :  { %v347_v44 = vadd.f32 %v432_v41, %v335_v42 }
 0x1a2   :  { %v337_v45 = vpop.f32.mrf.mxu0 }
 0x1a3   :  { %491 = vtanh.f32 %v347_v44  ;;  %v433_v49 = vmul.f32 -1.442695, %v347_v44 }
 0x1a4   :  { %v480_v46 = vpop.f32.mrf.mxu0 }
 0x1a5   :  { %493 = vpow2.f32 %v433_v49 }
 0x1b0   :  { %v492_v47 = vpop.eup %491 }
 0x1b1   :  { %362 = vrot.lane.b32.xlu0 %v492_v47, %s501_s8 }
 0x1b2   :  { %v494_v50 = vpop.eup %493 }
 0x1b3   :  { %v351_v51 = vadd.f32 1.0, %v494_v50 }
 0x1b5   :  { %357 = vrot.lane.b32.xlu0 %v355_v48, %s501_s8  ;;  %495 = vrcp.f32 %v351_v51 }
 0x1b9   :  { %383 = vrot.lane.b32.xlu0 %v434_v55, %s502_s28 }
 0x1c2   :  { %v496_v52 = vpop.eup %495 }
 0x223   :  { %v363_v53 = vpop.permute.xlu0 %362 }
 0x224   :  { %v365_v54 = vmul.f32 %v496_v52, %v363_v53 }
 0x226   :  { %367 = vrot.lane.b32.xlu1 %v365_v54, %s501_s8 }
 0x227   :  { %v358_v56 = vpop.permute.xlu0 %357 }
 0x228   :  { %v360_v57 = vmul.f32 %v496_v52, %v358_v56 }
 0x22b   :  { %v384_v62 = vpop.permute.xlu0 %383 }
 0x298   :  { %v368_v58 = vpop.permute.xlu1 %367 }
 0x299   :  { %v370_v59 = vadd.f32 %v368_v58, %v360_v57 }
 0x29b   :  { %497 = vtanh.f32 %v370_v59 }
 0x2a8   :  { %v498_v60 = vpop.eup %497 }
 0x2a9   :  { %373 = vrot.lane.b32.xlu1 %v498_v60, %s501_s8 }
 0x31b   :  { %v374_v61 = vpop.permute.xlu1 %373 }
 0x31c   :  { %v376_v63 = vmul.f32 %v496_v52, %v374_v61 }
 0x31e   :  { %v386_v0 = vmul.f32 %v384_v62, %v376_v63 }
 0x320   :  { %388 = vrot.lane.b32.xlu1 %v386_v0, %s502_s28 }
 0x324   :  { %400 = vrot.lane.b32.xlu1 %v376_v63, %s502_s28 }
 0x328   :  { %405 = vrot.lane.b32.xlu1 %v370_v59, %s503_s4 }
 0x392   :  { %v389_v1 = vpop.permute.xlu1 %388 }
 0x393   :  { %v391_v2 = vsel %vm241_vm6, %v389_v1, 0.0 }
 0x394   :  { %392 = vadd.xlane.f32.xlu0 %v391_v2 }
 0x396   :  { %v401_v3 = vpop.permute.xlu1 %400 }
 0x397   :  { %403 = vst.msk [vmem:[%s669_s15] sm:$0xff] %vm241_vm6, %v401_v3 }
 0x39a   :  { %v406_v4 = vpop.permute.xlu1 %405 }
 0x39b   :  { %408 = vst.msk [vmem:[%s670_s16] sm:$0xff] %vm241_vm6, %v406_v4 }
 0x41d   :  { %v393_v6 = vpop.xlane.xlu0 %392 }
 0x41e   :  { %v396_v7 = vadd.f32 %v395_v5, %v393_v6 }
 0x420   :  { %398 = vst.msk [vmem:[%s672_s14] sm:$0xff] %vm397_vm7, %v396_v7 }

</bundles_post_ra>
